<compile_context>
chip_gen: v7x
topology: tpu7x:2x2x1
jax: 0.10.0
libtpu: 0.0.40
codegen_flags: <defaults>
</compile_context>

<pallas_src>
import functools

import jax
import jax.numpy as jnp
from jax import lax
from jax.experimental import pallas as pl
from jax.experimental.pallas import tpu as pltpu


def _round_up(x, m):
    return (x + m - 1) // m * m


# Block-sized in-kernel temporaries (shifted, exp, iota/mask, weighted product)
# that Mosaic materializes on top of the f32 pred block.
_BLOCK_TEMPS = 4


def _vmem_capacity_bytes():
    """Physical VMEM of the local chip; conservative (v7x) if query fails."""
    try:
        return int(pltpu.get_tpu_info().vmem_capacity_bytes)
    except Exception:  # hardware query unavailable (interpret mode, old API, ...)
        return 64 * 1024 * 1024


def _per_row_vmem_bytes(c, in_itemsize):
    """VMEM bytes consumed per tile row (f32 compute footprint + I/O buffers)."""
    cp = _round_up(c, 128)
    return (cp * 4 * (1 + _BLOCK_TEMPS)   # f32 pred block + block-sized temporaries
            + 2 * cp * in_itemsize        # double-buffered input block (native dtype)
            + 2 * 128 * 4                 # double-buffered lane-padded target block
            + 2 * 8 * 4)                  # double-buffered lane-dense output row


def _choose_tile_rows(n, *, per_row, c, vmem_budget_bytes,
                      target_block_bytes=16 << 20, max_rows=8192,
                      min_grid_steps=2):
    """Largest row tile that fits the VMEM budget (temporaries included)."""
    cp = _round_up(c, 128)
    rows = min(max_rows,
               max(vmem_budget_bytes // per_row, 8),
               max(target_block_bytes // (cp * 4), 8))
    # Keep >= min_grid_steps grid steps when the batch allows it so the
    # "parallel" grid axis shards across both TensorCores on dual-TC chips (v7x).
    if n >= min_grid_steps * 128:
        rows = min(rows, -(-n // min_grid_steps))
    rows = min(rows, _round_up(n, 8))     # never tile past the problem
    gran = 128 if rows >= 128 else 8      # 128-granularity keeps output lane-dense
    return max((int(rows) // gran) * gran, gran)


def _label_smoothing_kernel(pred_ref, tgt_ref, out_ref, *, num_classes,
                            smoothing, lane_dense):
    """One tile of rows: fused log-softmax + smoothed NLL, single reduction."""
    confidence = 1.0 - smoothing
    off_value = smoothing / (num_classes - 1)
    lse_coeff = confidence + off_value * num_classes  # sum of the smoothed dist

    pred = pred_ref[...].astype(jnp.float32)          # (TM, C) (upcast if bf16)
    tgt = tgt_ref[...]                                # (TM, 1) int32

    m = jnp.max(pred, axis=-1, keepdims=True)         # (TM, 1)
    shifted = pred - m                                # (TM, C)
    e = jnp.exp(shifted)                              # (TM, C), EUP

    # Fused weighted reduction: w[r,c] = off + conf*[c == target[r]].
    cols = lax.broadcasted_iota(jnp.int32, shifted.shape, 1)
    w = jnp.where(cols == tgt, confidence + off_value, off_value)
    ws = w * shifted                                  # (TM, C)

    if lane_dense:
        # Row-sums on the (otherwise idle) MXU, produced lane-major (1, TM) so
        # the final store is an unmasked lane-dense vst (no (TM,1) relayout).
        ones_row = jnp.ones((1, num_classes), jnp.float32)
        dn = (((1,), (1,)), ((), ()))                 # contract class dims
        sum_e = lax.dot_general(ones_row, e, dn,
                                precision=lax.Precision.HIGHEST,
                                preferred_element_type=jnp.float32)   # (1, TM)
        smooth = lax.dot_general(ones_row, ws, dn,
                                 precision=lax.Precision.HIGHEST,
                                 preferred_element_type=jnp.float32)  # (1, TM)
    else:
        # Column-shaped path (huge-C / sub-128-row tiles): output traffic is
        # negligible there, plain VALU/XLU reductions are fine.
        sum_e = jnp.sum(e, axis=-1, keepdims=True)    # (TM, 1)
        smooth = jnp.sum(ws, axis=-1, keepdims=True)  # (TM, 1)

    out_ref[...] = lse_coeff * jnp.log(sum_e) - smooth


def label_smoothing_loss(pred, target, *, classes, smoothing=0.1,
                         tile_rows=None):
    """Pallas TPU forward of LabelSmoothingLoss (additive one-hot, dim=-1)."""
    n, c = pred.shape
    assert c == classes, (c, classes)
    assert classes >= 2, "smoothing/(classes-1) needs at least 2 classes"

    itemsize = jnp.dtype(pred.dtype).itemsize
    cap = _vmem_capacity_bytes()
    budget = (cap * 3) // 4                  # ~75% of physical VMEM
    per_row = _per_row_vmem_bytes(c, itemsize)

    if tile_rows is None:
        tile_rows = _choose_tile_rows(n, per_row=per_row, c=c,
                                      vmem_budget_bytes=budget)
    assert tile_rows > 0 and tile_rows % 8 == 0, tile_rows

    # No host-side padding: ragged last block is handled by Pallas (garbage
    # rows are row-independent and sliced off below; OOB targets only feed a
    # compare; the output array is sized so writes never go OOB).
    n_tiles = pl.cdiv(n, tile_rows)

    # Lane-dense output whenever block layout rules allow it.
    lane_dense = (n_tiles == 1) or (tile_rows % 128 == 0)

    tgt2d = target.astype(jnp.int32).reshape(n, 1)

    kernel = functools.partial(_label_smoothing_kernel, num_classes=classes,
                               smoothing=float(smoothing),
                               lane_dense=lane_dense)

    if lane_dense:
        out_shape = jax.ShapeDtypeStruct((1, n_tiles * tile_rows), jnp.float32)
        out_spec = pl.BlockSpec((1, tile_rows), lambda i: (0, i))
    else:
        out_shape = jax.ShapeDtypeStruct((n, 1), jnp.float32)
        out_spec = pl.BlockSpec((tile_rows, 1), lambda i: (i, 0))

    # VMEM limit: ~75% of physical (96 MiB on v5e/v6e, 48 MiB on v7x), widened
    # only if the 8-row floor (huge C) needs it.
    # TODO(synk): add a C-tiled online-LSE variant so vocab-scale class counts
    # keep large row tiles instead of leaning on this widened limit.
    vmem_limit = int(min(max(budget, tile_rows * per_row + (2 << 20)),
                         (cap * 31) // 32))

    out = pl.pallas_call(
        kernel,
        out_shape=out_shape,
        grid_spec=pltpu.PrefetchScalarGridSpec(
            num_scalar_prefetch=0,
            grid=(n_tiles,),
            in_specs=[
                pl.BlockSpec((tile_rows, c), lambda i: (i, 0)),
                pl.BlockSpec((tile_rows, 1), lambda i: (i, 0)),
            ],
            out_specs=out_spec,
        ),
        compiler_params=pltpu.CompilerParams(
            dimension_semantics=("parallel",),
            vmem_limit_bytes=vmem_limit,
        ),
    )(pred, tgt2d)

    return out.reshape(-1)[:n]


def _reference(pred, target, classes, smoothing):
    """Pure-JAX reference mirroring the PyTorch module (additive one-hot)."""
    logp = jax.nn.log_softmax(pred.astype(jnp.float32), axis=-1)
    onehot = jax.nn.one_hot(target, classes, dtype=jnp.float32)
    true_dist = onehot * (1.0 - smoothing) + smoothing / (classes - 1)
    return jnp.sum(-true_dist * logp, axis=-1)


if __name__ == "__main__":
    key = jax.random.PRNGKey(0)
    k1, k2, k3, k4 = jax.random.split(key, 4)
    SMOOTHING = 0.1

    # Primary small test (single tile, lane-dense output).
    N, C = 8, 32
    pred = jax.random.normal(k1, (N, C), dtype=jnp.float32)
    target = jax.random.randint(k2, (N,), 0, C, dtype=jnp.int32)
    out = jax.block_until_ready(
        label_smoothing_loss(pred, target, classes=C, smoothing=SMOOTHING))
    ref = _reference(pred, target, C, SMOOTHING)
    assert out.shape == (N,)
    assert jnp.allclose(out, ref, atol=1e-4, rtol=1e-5), (out, ref)

    # Ragged multi-tile check: no host padding, lane-dense multi-block output.
    N2, C2 = 300, 160
    pred2 = jax.random.normal(k3, (N2, C2), dtype=jnp.float32)
    target2 = jax.random.randint(k4, (N2,), 0, C2, dtype=jnp.int32)
    out2 = jax.block_until_ready(
        label_smoothing_loss(pred2, target2, classes=C2, smoothing=SMOOTHING,
                             tile_rows=128))
    ref2 = _reference(pred2, target2, C2, SMOOTHING)
    assert out2.shape == (N2,)
    assert jnp.allclose(out2, ref2, atol=1e-4, rtol=1e-5), (out2, ref2)

    print("KERNEL_OK")
</pallas_src>

<mosaic_0001>
module attributes {stable_mosaic.version = 11 : i64} {
  func.func @_label_smoothing_kernel(%arg0: i32, %arg1: memref<8x32xf32, #tpu.memory_space<vmem>>, %arg2: memref<8x1xi32, #tpu.memory_space<vmem>>, %arg3: memref<1x8xf32, #tpu.memory_space<vmem>>) attributes {dimension_semantics = [#tpu.dimension_semantics<parallel>], iteration_bounds = array<i64: 1>, scalar_prefetch = 0 : i64, scratch_operands = 0 : i64, tpu.core_type = #tpu.core_type<tc>, window_params = [{transform_indices = @transform_0, window_bounds = array<i64: 8, 32>}, {transform_indices = @transform_1, window_bounds = array<i64: 8, 1>}, {transform_indices = @transform_2, window_bounds = array<i64: 1, 8>}]} {
    %c0 = arith.constant 0 : index
    %c0_0 = arith.constant 0 : index
    %0 = vector.load %arg1[%c0, %c0_0] : memref<8x32xf32, #tpu.memory_space<vmem>>, vector<8x32xf32>
    %c0_1 = arith.constant 0 : index
    %c0_2 = arith.constant 0 : index
    %1 = vector.load %arg2[%c0_1, %c0_2] : memref<8x1xi32, #tpu.memory_space<vmem>>, vector<8x1xi32>
    %cst = arith.constant dense<0xFF800000> : vector<8xf32>
    %2 = vector.multi_reduction <maximumf>, %0, %cst [1] : vector<8x32xf32> to vector<8xf32>
    %3 = vector.shape_cast %2 : vector<8xf32> to vector<8x1xf32>
    %4 = vector.broadcast %3 : vector<8x1xf32> to vector<8x32xf32>
    %5 = arith.subf %0, %4 : vector<8x32xf32>
    %6 = math.exp %5 : vector<8x32xf32>
    %7 = tpu.iota {dimensions = array<i32: 1>} : vector<8x32xi32>
    %8 = vector.broadcast %1 : vector<8x1xi32> to vector<8x32xi32>
    %9 = arith.cmpi eq, %7, %8 : vector<8x32xi32>
    %cst_3 = arith.constant 0.903225779 : f32
    %cst_4 = arith.constant 0.0032258064 : f32
    %10 = vector.broadcast %cst_3 : f32 to vector<8x32xf32>
    %11 = vector.broadcast %cst_4 : f32 to vector<8x32xf32>
    %12 = arith.select %9, %10, %11 : vector<8x32xi1>, vector<8x32xf32>
    %13 = arith.mulf %12, %5 : vector<8x32xf32>
    %cst_5 = arith.constant 1.000000e+00 : f32
    %14 = vector.broadcast %cst_5 : f32 to vector<1x32xf32>
    %cst_6 = arith.constant dense<0.000000e+00> : vector<1x8xf32>
    %15 = tpu.matmul %14, %6, %cst_6 {dimension_numbers = #tpu.dot_dimension_numbers<[1], [1], [0], [0], [0, 0, 1, 0], [], []>, precision = #tpu.contract_precision<fp32>} : vector<1x32xf32>, vector<8x32xf32>, vector<1x8xf32> -> vector<1x8xf32>
    %cst_7 = arith.constant dense<0.000000e+00> : vector<1x8xf32>
    %16 = tpu.matmul %14, %13, %cst_7 {dimension_numbers = #tpu.dot_dimension_numbers<[1], [1], [0], [0], [0, 0, 1, 0], [], []>, precision = #tpu.contract_precision<fp32>} : vector<1x32xf32>, vector<8x32xf32>, vector<1x8xf32> -> vector<1x8xf32>
    %17 = math.log %15 : vector<1x8xf32>
    %cst_8 = arith.constant 1.0032258 : f32
    %18 = vector.broadcast %cst_8 : f32 to vector<1x8xf32>
    %19 = arith.mulf %18, %17 : vector<1x8xf32>
    %20 = arith.subf %19, %16 : vector<1x8xf32>
    %c0_9 = arith.constant 0 : index
    %c0_10 = arith.constant 0 : index
    %21 = vector.load %arg3[%c0_9, %c0_10] : memref<1x8xf32, #tpu.memory_space<vmem>>, vector<1x8xf32>
    tpu.vector_store %arg3[%c0_9, %c0_10], %20 {strides = array<i32>} : memref<1x8xf32, #tpu.memory_space<vmem>>, vector<1x8xf32>,
    return
  }
  func.func @transform_0(%arg0: i32) -> (i32, i32) {
    %c0_i32 = arith.constant 0 : i32
    %c0_i32_0 = arith.constant 0 : i32
    return %arg0, %c0_i32 : i32, i32
  }
  func.func @transform_1(%arg0: i32) -> (i32, i32) {
    %c0_i32 = arith.constant 0 : i32
    %c0_i32_0 = arith.constant 0 : i32
    return %arg0, %c0_i32 : i32, i32
  }
  func.func @transform_2(%arg0: i32) -> (i32, i32) {
    %c0_i32 = arith.constant 0 : i32
    %c0_i32_0 = arith.constant 0 : i32
    return %c0_i32, %arg0 : i32, i32
  }
}

</mosaic_0001>

<bundles_post_ra>
// kernel: tpu_custom_call.1
= control target key start
LH: loop header
LB: loop body
LE: loop exit
PB: predicated region body
PF: predicated region fallthrough
CT: control target
= control target key end

     0   :  { %vm14_vm0 = vcmask 261120   ;;  %s1180_s0 = inlined_call_operand.vmem [shape: f32[8,32], index: 0, kind: input, shape index: {}]   ;;  %s1181_s1 = inlined_call_operand.vmem [shape: s32[8,1], index: 1, kind: input, shape index: {}]   ;;  %s1182_s2 = inlined_call_operand.hbm [shape: f32[1,8], index: 2, kind: output, shape index: {}]  }
   0x1   :  { %v12_v0 = vld [vmem:[%s1180_s0] sm:$0xff] }
   0x2   :  { %7 = vsyncpa [#allocation3], 0  ;;  %v15_v1 = vsel %vm14_vm0, %v12_v0, -inf  ;;  %v1095_v2 = vmov 0   ;;  %v13_v3 = vld [vmem:[%s1181_s1] sm:$0xff]  ;;  %v1096_v4 = vmov 0.0   ;;  %v21_v8 = vlaneseq }
   0x3   :  { %1066 = vset.pattern.permute.xlu0 %v1095_v2  ;;  %1010 = vmatprep.subr.mxu1 %v1096_v4  ;;  %vm1097_vm1 = vmmov 0   ;;  %v30_v5 = vsel %vm14_vm0, 1.0, %v1095_v2  ;;  %v1098_v14 = vmov 0.0032258064   ;;  %v1099_v32 = vmov 1.0   ;;  %s1100_s0 = smov [#allocation2]  }
   0x4   :  { %16 = vmax.xlane.f32.xlu0 %v15_v1  ;;  %980 = vmatprep.subr.mxu0 %v1096_v4  ;;  %v102_v9 = vsub.f32 %v30_v5, %v30_v5  ;;  %v22_v11 = vand.u32 127, %v21_v8  ;;  %s942_s1 = sshll.u32 %s1100_s0, 4  ;;  %vm934_vm3 = vcmask 57344   ;;  %s943_s1 = int_to_ptr.vmem [resolvable:$true] %s942_s1 }
   0x5   :  { %1012 = vmatprep.mubr.msk.f32.mxu1 %vm1097_vm1, %v1096_v4  ;;  %982 = vmatprep.mubr.msk.f32.mxu0 %vm1097_vm1, %v1096_v4  ;;  %s1071_s13 = scalar_lea.vmem %s943_s1, 16  ;;  %s1075_s14 = scalar_lea.vmem %s943_s1, 32 }
   0x6   :  { %v103_v12 = vand.u32 4294901760, %v102_v9  ;;  %p1072_p0 = scmp.ne.s32.totalorder %s943_s1, %s1071_s13  ;;  %p1076_p1 = scmp.lt.s32.totalorder %s943_s1, %s943_s1 }
   0x7   :  { %p1077_p2 = scmp.lt.s32.totalorder %s1075_s14, %s1071_s13 }
   0x8   :  { %v104_v17 = vsub.f32 %v102_v9, %v103_v12 }
   0x9   :  { %p1078_p3 = por %p1077_p2, %p1076_p1 }
   0xa   :  { %v105_v21 = vand.u32 4294901760, %v104_v17 }
   0xb   :  { %p1079_p4 = pnand %p1078_p3, %p1072_p0 }
  0x1a   :  { %24 = vperm.xlu0 %1066, %v13_v3  }
  0x91   :  { %v17_v6 = vpop.xlane.xlu0 %16 }
  0x92   :  { %v18_v7 = vsub.f32 %v12_v0, %v17_v6 }
  0x94   :  { %v19_v10 = vmul.f32 1.442695, %v18_v7 }
  0x96   :  { %1067 = vpow2.f32 %v19_v10 }
  0x99   :  { %v25_v13 = vpop.permute.xlu0 %24 }
  0x9a   :  { %vm26_vm2 = vcmp.eq.s32.totalorder %v22_v11, %v25_v13 }
  0x9b   :  { %v27_v15 = vsel %vm26_vm2, 0.9032258, %v1098_v14 }
  0x9c   :  { %v28_v16 = vmul.f32 %v27_v15, %v18_v7 }
  0x9e   :  { %v482_v18 = vsel %vm14_vm0, %v28_v16, 0 }
  0x9f   :  { %v485_v19 = vand.u32 4294901760, %v482_v18 }
  0xa0   :  { %v1068_v20 = vpop.eup %1067 }
  0xa1   :  { %v562_v22 = vsub.f32 %v482_v18, %v485_v19  ;;  %1011 = vmatpush3.xpose.msra.mxu1 %v485_v19  ;;  %v33_v23 = vsel %vm14_vm0, %v1068_v20, 0 }
  0xa2   :  { %v36_v24 = vand.u32 4294901760, %v33_v23  ;;  %1015 = vmatprep.subr.mxu1 %v1096_v4 }
  0xa3   :  { %v563_v25 = vand.u32 4294901760, %v562_v22 }
  0xa4   :  { %981 = vmatpush3.xpose.msra.mxu0 %v36_v24  ;;  %v113_v26 = vsub.f32 %v33_v23, %v36_v24  ;;  %1013 = vmatmul.mubr.f32.vlgmr.msra.gmra.mrb[0].mxu1 %v105_v21 }
  0xa5   :  { %v564_v27 = vsub.f32 %v562_v22, %v563_v25  ;;  %985 = vmatprep.subr.mxu0 %v1096_v4  ;;  %1017 = vmatprep.mubr.msk.f32.mxu1 %vm1097_vm1, %v1096_v4 }
  0xa6   :  { %v114_v28 = vand.u32 4294901760, %v113_v26 }
  0xa7   :  { %983 = vmatmul.mubr.f32.vlgmr.msra.gmra.mrb[0].mxu0 %v105_v21  ;;  %v565_v29 = vand.u32 4294901760, %v564_v27 }
  0xa8   :  { %v115_v30 = vsub.f32 %v113_v26, %v114_v28  ;;  %987 = vmatprep.mubr.msk.f32.mxu0 %vm1097_vm1, %v1096_v4 }
  0xa9   :  { %1016 = vmatpush3.xpose.msra.mxu1 %v565_v29 }
  0xaa   :  { %v116_v31 = vand.u32 4294901760, %v115_v30  ;;  %1020 = vmatprep.subr.mxu1 %v1096_v4 }
  0xac   :  { %986 = vmatpush3.xpose.msra.mxu0 %v116_v31  ;;  %1018 = vmatmul.mubr.msk.f32.vlgmr.msra.gmra.mrb[0].mxu1 %vm14_vm0, %v1099_v32 }
  0xad   :  { %1021 = vmatpush3.xpose.msra.mxu1 %v562_v22  ;;  %990 = vmatprep.subr.mxu0 %v1096_v4 }
  0xae   :  { %1022 = vmatprep.mubr.msk.f32.mxu1 %vm1097_vm1, %v1096_v4  ;;  %1025 = vmatprep.subr.mxu1 %v1096_v4 }
  0xaf   :  { %988 = vmatmul.mubr.msk.f32.vlgmr.msra.gmra.mrb[0].mxu0 %vm14_vm0, %v1099_v32 }
  0xb0   :  { %991 = vmatpush3.xpose.msra.mxu0 %v113_v26  ;;  %992 = vmatprep.mubr.msk.f32.mxu0 %vm1097_vm1, %v1096_v4 }
  0xb1   :  { %995 = vmatprep.subr.mxu0 %v1096_v4 }
  0xb4   :  { %1023 = vmatmul.mubr.f32.vlgmr.msra.gmra.mrb[0].mxu1 %v102_v9 }
  0xb5   :  { %1026 = vmatpush3.xpose.msra.mxu1 %v485_v19  ;;  %1027 = vmatprep.mubr.msk.f32.mxu1 %vm1097_vm1, %v1096_v4 }
  0xb6   :  { %1030 = vmatprep.subr.mxu1 %v1096_v4 }
  0xb7   :  { %993 = vmatmul.mubr.f32.vlgmr.msra.gmra.mrb[0].mxu0 %v102_v9 }
  0xb8   :  { %996 = vmatpush3.xpose.msra.mxu0 %v36_v24  ;;  %997 = vmatprep.mubr.msk.f32.mxu0 %vm1097_vm1, %v1096_v4 }
  0xb9   :  { %1000 = vmatprep.subr.mxu0 %v1096_v4 }
  0xbc   :  { %1028 = vmatmul.mubr.f32.vlgmr.msra.gmra.mrb[0].mxu1 %v103_v12 }
  0xbd   :  { %1031 = vmatpush3.xpose.msra.mxu1 %v563_v25  ;;  %1032 = vmatprep.mubr.msk.f32.mxu1 %vm1097_vm1, %v1096_v4 }
  0xbe   :  { %1035 = vmatprep.subr.mxu1 %v1096_v4 }
  0xbf   :  { %998 = vmatmul.mubr.f32.vlgmr.msra.gmra.mrb[0].mxu0 %v103_v12 }
  0xc0   :  { %1001 = vmatpush3.xpose.msra.mxu0 %v114_v28  ;;  %1002 = vmatprep.mubr.msk.f32.mxu0 %vm1097_vm1, %v1096_v4 }
  0xc1   :  { %1005 = vmatprep.subr.mxu0 %v1096_v4 }
  0xc4   :  { %1033 = vmatmul.mubr.msk.f32.vlgmr.msra.gmra.mrb[0].mxu1 %vm14_vm0, %v1099_v32 }
  0xc5   :  { %1036 = vmatpush3.xpose.msra.mxu1 %v485_v19  ;;  %1037 = vmatprep.mubr.msk.f32.mxu1 %vm1097_vm1, %v1096_v4 }
  0xc7   :  { %1003 = vmatmul.mubr.msk.f32.vlgmr.msra.gmra.mrb[0].mxu0 %vm14_vm0, %v1099_v32 }
  0xc8   :  { %1006 = vmatpush3.xpose.msra.mxu0 %v36_v24  ;;  %1007 = vmatprep.mubr.msk.f32.mxu0 %vm1097_vm1, %v1096_v4 }
  0xcc   :  { %1038 = vmatmul.mubr.msk.f32.vlgmr.msra.gmra.mrb[0].mxu1 %vm14_vm0, %v1099_v32 }
  0xcf   :  { %1008 = vmatmul.mubr.msk.f32.vlgmr.msra.gmra.mrb[0].mxu0 %vm14_vm0, %v1099_v32 }
 0x19f   :  { %v926_v33 = vpop.f32.mrb[0].mxu1 }
 0x1a0   :  { %v1039_v34 = vpop.f32.mrb[1].mxu1 }
 0x1a2   :  { %v477_v35 = vpop.f32.mrb[0].mxu0 }
 0x1a3   :  { %1069 = vlog2.f32 %v477_v35  ;;  %v1009_v36 = vpop.f32.mrb[1].mxu0 }
 0x1ad   :  { %v1070_v37 = vpop.eup %1069 }
 0x1ae   :  { %v931_v38 = vmul.f32 0.6931472, %v1070_v37 }
 0x1b0   :  { %v932_v39 = vmul.f32 1.0032258, %v931_v38 }
 0x1b2   :  { %v933_v40 = vsub.f32 %v932_v39, %v926_v33 }
 0x1b4   :  { %935 = vst.msk [vmem:[#allocation2] sm:$0x1] %vm934_vm3, %v933_v40 }
 0x1b5   :  { %1082 = shalt.err (!%p1079_p4)
}
 0x1b6   :  { %s1083_s17 = scalar_lea.hbm %s1182_s2, 16 }
 0x1b7   :  { %p1084_p5 = scmp.ne.s32.totalorder %s1182_s2, %s1083_s17  ;;  %p1087_p6 = scmp.lt.u32.totalorder %s1083_s17, %s1182_s2 }
 0x1b9   :  { %p1089_p7 = pnand %p1087_p6, %p1084_p5 }
 0x1bb   :  { %1092 = shalt.err (!%p1089_p7)
}
 0x1bc   :  { %945 = dma.vmem_to_hbm [thread:$0]  %s943_s1, 16, %s1182_s2, [#allocation3]  }
 0x1bd   :  { %1093 = dma.done.wait [#allocation3], 16  }
 0x1be   :  { %1094 = vsyncadd [#allocation3], 4294967280 }
 0x1bf   :  { %949 = vsyncpa [#allocation3], 1 }

</bundles_post_ra>
